<compile_context>
chip_gen: v7x
topology: tpu7x:2x2x1
jax: 0.10.0
libtpu: 0.0.40
codegen_flags: <defaults>
</compile_context>

<pallas_src>
import jax
import jax.numpy as jnp
from jax.experimental import pallas as pl
from jax.experimental.pallas import tpu as pltpu


def _round_up(x, m):
    return ((x + m - 1) // m) * m


# --------------------------------------------------------------------------- #
# Kernels
# --------------------------------------------------------------------------- #
def _ffn_kernel_f32out(x_ref, w1_ref, b1_ref, w2_ref, b2_ref, o_ref):
    # f32 output: accumulate directly into the resident output block (no scratch).
    k = pl.program_id(1)

    @pl.when(k == 0)
    def _init():
        # Fold b2 into the accumulator init (no separate epilogue add).
        o_ref[...] = jnp.broadcast_to(b2_ref[...], o_ref.shape)

    h = jnp.dot(x_ref[...], w1_ref[...], preferred_element_type=jnp.float32)
    h = jnp.maximum(h + b1_ref[...], 0.0)
    o_ref[...] += jnp.dot(h.astype(w2_ref.dtype), w2_ref[...],
                          preferred_element_type=jnp.float32)
    # TODO(synk): training-mode dropout (pltpu.prng_seed + prng_random_bits mask
    # + 1/(1-p) scale) omitted; this matches nn.Dropout in eval mode.


def _ffn_kernel_acc(x_ref, w1_ref, b1_ref, w2_ref, b2_ref, o_ref, acc_ref):
    # Non-f32 output: keep an f32 accumulator scratch and cast on finalize.
    k = pl.program_id(1)

    @pl.when(k == 0)
    def _init():
        acc_ref[...] = jnp.broadcast_to(b2_ref[...], acc_ref.shape)

    h = jnp.dot(x_ref[...], w1_ref[...], preferred_element_type=jnp.float32)
    h = jnp.maximum(h + b1_ref[...], 0.0)
    acc_ref[...] += jnp.dot(h.astype(w2_ref.dtype), w2_ref[...],
                            preferred_element_type=jnp.float32)

    @pl.when(k == pl.num_programs(1) - 1)
    def _finalize():
        o_ref[...] = acc_ref[...].astype(o_ref.dtype)


# --------------------------------------------------------------------------- #
# Chip / capability policy
# --------------------------------------------------------------------------- #
def _supports_pipeline_mode():
    """Explicit feature probe for BlockSpec(pipeline_mode=pl.Buffered(...))."""
    if not hasattr(pl, "Buffered"):
        return False
    try:
        pl.BlockSpec((8, 128), lambda i: (0, 0), pipeline_mode=pl.Buffered(1))
    except TypeError:
        return False
    return True


def _chip_policy():
    """Return (num_tensorcores, vmem_budget_bytes, vmem_cap_bytes) for this chip."""
    kind = getattr(jax.devices()[0], "device_kind", "").lower()
    if "v2" in kind or "v3" in kind:
        return 1, 12 << 20, 16 << 20
    if "v7" in kind or "7x" in kind:
        # 64 MiB/TC physical: leave headroom so double-buffering survives.
        return 2, 50 << 20, 64 << 20
    if "v4" in kind or "v5" in kind or "v6" in kind:
        # 128 MiB physical: use most of it (resident weights + big row tiles).
        return 1, 100 << 20, 128 << 20
    return 1, 48 << 20, 64 << 20


def _select_tiling(M, Cp, Hp, w_itemsize, out_itemsize, acc_in_out,
                   budget, num_tc, single_buf_ok):
    """Pick (nm, tm, nk, th, vmem_need): prefer resident weights, then big tm."""

    def vmem_need(tm, th, n_wbuf):
        wbytes = n_wbuf * w_itemsize * (Cp * th + th * Cp)      # W1 + W2 chunk(s)
        bbytes = n_wbuf * th * 4 + Cp * 4                       # b1 chunk(s) + b2
        xbytes = 2 * tm * Cp * w_itemsize                       # x, double-buffered
        obytes = 2 * tm * Cp * out_itemsize                     # out, double-buffered
        accbytes = 0 if acc_in_out else tm * Cp * 4             # f32 acc scratch
        hbytes = tm * th * (4 + w_itemsize)                     # f32 h + cast copy
        return wbytes + bbytes + xbytes + obytes + accbytes + hbytes

    def row_split(tm_cap):
        nm = max(1, -(-M // tm_cap))
        if num_tc > 1 and nm > 1 and nm % num_tc:
            nm += num_tc - (nm % num_tc)          # equal work on every TensorCore
        tm = _round_up(max(1, -(-M // nm)), 8)    # balanced tiles, <8 rows padding
        return nm, tm

    # Hidden-dim chunk candidates: multiples of 128 that divide Hp, largest first
    # (th == Hp first => weights fully resident, DMA'd exactly once per call).
    n128 = Hp // 128
    th_candidates = sorted({128 * d for d in range(1, n128 + 1) if n128 % d == 0},
                           reverse=True)

    for th in th_candidates:
        resident = th == Hp
        n_wbuf = 1 if (resident and single_buf_ok) else 2
        for tm_cap in (512, 256, 128, 64, 32, 16, 8):
            nm, tm = row_split(tm_cap)
            need = vmem_need(tm, th, n_wbuf)
            if need <= budget:
                return nm, tm, Hp // th, th, need

    # Nothing fits the budget: smallest configuration (vmem_limit raised later).
    nm, tm = row_split(8)
    return nm, tm, Hp // 128, 128, vmem_need(tm, 128, 2)


# --------------------------------------------------------------------------- #
# One-time weight prep (do at model init, NOT per forward call)
# --------------------------------------------------------------------------- #
def prepare_ffn_params(w1, b1, w2, b2, *, compute_dtype=jnp.bfloat16):
    """Zero-pad C/H to multiples of 128 and cast weights to the compute dtype.

    `compute_dtype` is the explicit precision knob: bf16 (default, MXU-native)
    or f32 for full precision at lower throughput. Biases stay f32.
    """
    C, H = w1.shape
    assert w2.shape == (H, C) and b1.shape == (H,) and b2.shape == (C,)
    Cp = _round_up(C, 128)
    Hp = _round_up(H, 128)
    return dict(
        w1=jnp.pad(w1, ((0, Cp - C), (0, Hp - H))).astype(compute_dtype),
        b1=jnp.pad(b1, (0, Hp - H)).astype(jnp.float32).reshape(1, Hp),
        w2=jnp.pad(w2, ((0, Hp - H), (0, Cp - C))).astype(compute_dtype),
        b2=jnp.pad(b2, (0, Cp - C)).astype(jnp.float32).reshape(1, Cp),
        n_embd=C,
        hidden=H,
    )


# --------------------------------------------------------------------------- #
# Forward wrapper
# --------------------------------------------------------------------------- #
def feed_forward(x, params):
    """x: (B, T, n_embd) -> (B, T, n_embd).  Eval-mode FFN (dropout = identity)."""
    w1p, b1p, w2p, b2p = params["w1"], params["b1"], params["w2"], params["b2"]
    C = params["n_embd"]
    Cp, Hp = w1p.shape
    B, T, Cin = x.shape
    assert Cin == C
    M = B * T

    out_dtype = x.dtype
    out_itemsize = jnp.dtype(out_dtype).itemsize
    w_itemsize = jnp.dtype(w1p.dtype).itemsize
    acc_in_out = jnp.dtype(out_dtype) == jnp.dtype(jnp.float32)

    num_tc, vmem_budget, vmem_cap = _chip_policy()
    single_buf_ok = _supports_pipeline_mode()
    nm, tm, nk, th, need = _select_tiling(
        M, Cp, Hp, w_itemsize, out_itemsize, acc_in_out,
        vmem_budget, num_tc, single_buf_ok)
    Mp = nm * tm

    # Pad rows/lanes with zeros (exact: padded rows/cols drop out) and cast x to
    # the compute dtype in the wrapper so the kernel DMAs half the bytes.
    x2d = jnp.pad(x.reshape(M, C), ((0, Mp - M), (0, Cp - C))).astype(w1p.dtype)

    vmem_limit = int(min(vmem_cap, max(vmem_budget, need + (4 << 20))))

    def wspec(shape, imap, invariant):
        # Grid-invariant blocks don't need a second pipeline buffer.
        if invariant and single_buf_ok:
            return pl.BlockSpec(shape, imap, pipeline_mode=pl.Buffered(1))
        return pl.BlockSpec(shape, imap)

    if acc_in_out:
        kernel = _ffn_kernel_f32out
        scratch_shapes = []
    else:
        kernel = _ffn_kernel_acc
        scratch_shapes = [pltpu.VMEM((tm, Cp), jnp.float32)]

    out2d = pl.pallas_call(
        kernel,
        out_shape=jax.ShapeDtypeStruct((Mp, Cp), out_dtype),
        grid_spec=pltpu.PrefetchScalarGridSpec(
            num_scalar_prefetch=0,
            grid=(nm, nk),                                   # reduction axis last
            in_specs=[
                pl.BlockSpec((tm, Cp), lambda i, k: (i, 0)),          # x tile
                wspec((Cp, th), lambda i, k: (0, k), nk == 1),        # W1
                wspec((1, th), lambda i, k: (0, k), nk == 1),         # b1
                wspec((th, Cp), lambda i, k: (k, 0), nk == 1),        # W2
                wspec((1, Cp), lambda i, k: (0, 0), True),            # b2
            ],
            out_specs=pl.BlockSpec((tm, Cp), lambda i, k: (i, 0)),
            scratch_shapes=scratch_shapes,
        ),
        compiler_params=pltpu.CompilerParams(
            dimension_semantics=("parallel", "arbitrary"),
            vmem_limit_bytes=vmem_limit,
        ),
    )(x2d, w1p, b1p, w2p, b2p)

    return out2d[:M, :C].reshape(B, T, C)


# --------------------------------------------------------------------------- #
def _reference(x, w1, b1, w2, b2):
    h = jnp.maximum(jnp.einsum("btc,ch->bth", x, w1) + b1, 0.0)
    return jnp.einsum("bth,hc->btc", h, w2) + b2


if __name__ == "__main__":
    # Small shapes consistent with the module: n_embd=32, hidden=4*n_embd=128.
    B, T, n_embd = 2, 8, 32
    hidden = 4 * n_embd
    dropout = 0.1  # unused at inference (eval-mode identity)

    key = jax.random.PRNGKey(0)
    kx, k1, k2, k3, k4 = jax.random.split(key, 5)

    x = jax.random.normal(kx, (B, T, n_embd), dtype=jnp.float32)
    w1 = jax.random.normal(k1, (n_embd, hidden), dtype=jnp.float32) * (1.0 / n_embd**0.5)
    b1 = jax.random.normal(k2, (hidden,), dtype=jnp.float32) * 0.01
    w2 = jax.random.normal(k3, (hidden, n_embd), dtype=jnp.float32) * (1.0 / hidden**0.5)
    b2 = jax.random.normal(k4, (n_embd,), dtype=jnp.float32) * 0.01

    params = prepare_ffn_params(w1, b1, w2, b2)          # one-time pad + bf16 cast
    out = jax.block_until_ready(feed_forward(x, params))
    ref = _reference(x, w1, b1, w2, b2)

    assert out.shape == (B, T, n_embd)
    # bf16 MXU inputs with f32 accumulation => bf16-level tolerance vs f32 ref.
    err = float(jnp.max(jnp.abs(out - ref)))
    assert jnp.allclose(out, ref, atol=5e-2, rtol=5e-2), f"mismatch, max abs err={err}"

    print("KERNEL_OK")
</pallas_src>

<mosaic_0001>
module attributes {stable_mosaic.version = 11 : i64} {
  func.func @_ffn_kernel_f32out(%arg0: i32, %arg1: i32, %arg2: memref<16x128xbf16, #tpu.memory_space<vmem>>, %arg3: memref<128x128xbf16, #tpu.memory_space<vmem>>, %arg4: memref<1x128xf32, #tpu.memory_space<vmem>>, %arg5: memref<128x128xbf16, #tpu.memory_space<vmem>>, %arg6: memref<1x128xf32, #tpu.memory_space<vmem>>, %arg7: memref<16x128xf32, #tpu.memory_space<vmem>>) attributes {dimension_semantics = [#tpu.dimension_semantics<parallel>, #tpu.dimension_semantics<arbitrary>], iteration_bounds = array<i64: 1, 1>, scalar_prefetch = 0 : i64, scratch_operands = 0 : i64, tpu.core_type = #tpu.core_type<tc>, window_params = [{transform_indices = @transform_0, window_bounds = array<i64: 16, 128>}, {pipeline_mode = #tpu.pipeline_mode<synchronous>, transform_indices = @transform_1, window_bounds = array<i64: 128, 128>}, {pipeline_mode = #tpu.pipeline_mode<synchronous>, transform_indices = @transform_2, window_bounds = array<i64: 1, 128>}, {pipeline_mode = #tpu.pipeline_mode<synchronous>, transform_indices = @transform_3, window_bounds = array<i64: 128, 128>}, {pipeline_mode = #tpu.pipeline_mode<synchronous>, transform_indices = @transform_4, window_bounds = array<i64: 1, 128>}, {transform_indices = @transform_5, window_bounds = array<i64: 16, 128>}]} {
    %c0_i32 = arith.constant 0 : i32
    %0 = arith.cmpi eq, %arg1, %c0_i32 : i32
    %1 = arith.extui %0 : i1 to i32
    %c0_i32_0 = arith.constant 0 : i32
    %2 = arith.cmpi ne, %1, %c0_i32_0 : i32
    scf.if %2 {
      %c0_14 = arith.constant 0 : index
      %c0_15 = arith.constant 0 : index
      %17 = vector.load %arg6[%c0_14, %c0_15] : memref<1x128xf32, #tpu.memory_space<vmem>>, vector<1x128xf32>
      %18 = vector.shape_cast %17 : vector<1x128xf32> to vector<1x128xf32>
      %19 = vector.broadcast %18 : vector<1x128xf32> to vector<16x128xf32>
      %c0_16 = arith.constant 0 : index
      %c0_17 = arith.constant 0 : index
      %20 = vector.load %arg7[%c0_16, %c0_17] : memref<16x128xf32, #tpu.memory_space<vmem>>, vector<16x128xf32>
      tpu.vector_store %arg7[%c0_16, %c0_17], %19 {strides = array<i32>} : memref<16x128xf32, #tpu.memory_space<vmem>>, vector<16x128xf32>,
    } else {
    }
    %c0 = arith.constant 0 : index
    %c0_1 = arith.constant 0 : index
    %3 = vector.load %arg2[%c0, %c0_1] : memref<16x128xbf16, #tpu.memory_space<vmem>>, vector<16x128xbf16>
    %c0_2 = arith.constant 0 : index
    %c0_3 = arith.constant 0 : index
    %4 = vector.load %arg3[%c0_2, %c0_3] : memref<128x128xbf16, #tpu.memory_space<vmem>>, vector<128x128xbf16>
    %cst = arith.constant dense<0.000000e+00> : vector<16x128xf32>
    %5 = tpu.matmul %3, %4, %cst {dimension_numbers = #tpu.dot_dimension_numbers<[1], [0], [0], [1], [0, 0, 1, 1], [], []>} : vector<16x128xbf16>, vector<128x128xbf16>, vector<16x128xf32> -> vector<16x128xf32>
    %c0_4 = arith.constant 0 : index
    %c0_5 = arith.constant 0 : index
    %6 = vector.load %arg4[%c0_4, %c0_5] : memref<1x128xf32, #tpu.memory_space<vmem>>, vector<1x128xf32>
    %7 = vector.broadcast %6 : vector<1x128xf32> to vector<16x128xf32>
    %8 = arith.addf %5, %7 : vector<16x128xf32>
    %cst_6 = arith.constant 0.000000e+00 : f32
    %9 = vector.broadcast %cst_6 : f32 to vector<16x128xf32>
    %10 = arith.maximumf %8, %9 : vector<16x128xf32>
    %c0_7 = arith.constant 0 : index
    %c0_8 = arith.constant 0 : index
    %11 = vector.load %arg7[%c0_7, %c0_8] : memref<16x128xf32, #tpu.memory_space<vmem>>, vector<16x128xf32>
    %12 = arith.truncf %10 : vector<16x128xf32> to vector<16x128xbf16>
    %c0_9 = arith.constant 0 : index
    %c0_10 = arith.constant 0 : index
    %13 = vector.load %arg5[%c0_9, %c0_10] : memref<128x128xbf16, #tpu.memory_space<vmem>>, vector<128x128xbf16>
    %cst_11 = arith.constant dense<0.000000e+00> : vector<16x128xf32>
    %14 = tpu.matmul %12, %13, %cst_11 {dimension_numbers = #tpu.dot_dimension_numbers<[1], [0], [0], [1], [0, 0, 1, 1], [], []>} : vector<16x128xbf16>, vector<128x128xbf16>, vector<16x128xf32> -> vector<16x128xf32>
    %15 = arith.addf %11, %14 : vector<16x128xf32>
    %c0_12 = arith.constant 0 : index
    %c0_13 = arith.constant 0 : index
    %16 = vector.load %arg7[%c0_12, %c0_13] : memref<16x128xf32, #tpu.memory_space<vmem>>, vector<16x128xf32>
    tpu.vector_store %arg7[%c0_12, %c0_13], %15 {strides = array<i32>} : memref<16x128xf32, #tpu.memory_space<vmem>>, vector<16x128xf32>,
    return
  }
  func.func @transform_0(%arg0: i32, %arg1: i32) -> (i32, i32) {
    %c0_i32 = arith.constant 0 : i32
    %c0_i32_0 = arith.constant 0 : i32
    return %arg0, %c0_i32 : i32, i32
  }
  func.func @transform_1(%arg0: i32, %arg1: i32) -> (i32, i32) {
    %c0_i32 = arith.constant 0 : i32
    %c0_i32_0 = arith.constant 0 : i32
    return %c0_i32, %arg1 : i32, i32
  }
  func.func @transform_2(%arg0: i32, %arg1: i32) -> (i32, i32) {
    %c0_i32 = arith.constant 0 : i32
    %c0_i32_0 = arith.constant 0 : i32
    return %c0_i32, %arg1 : i32, i32
  }
  func.func @transform_3(%arg0: i32, %arg1: i32) -> (i32, i32) {
    %c0_i32 = arith.constant 0 : i32
    %c0_i32_0 = arith.constant 0 : i32
    return %arg1, %c0_i32 : i32, i32
  }
  func.func @transform_4(%arg0: i32, %arg1: i32) -> (i32, i32) {
    %c0_i32 = arith.constant 0 : i32
    %c0_i32_0 = arith.constant 0 : i32
    %c0_i32_1 = arith.constant 0 : i32
    return %c0_i32, %c0_i32_0 : i32, i32
  }
  func.func @transform_5(%arg0: i32, %arg1: i32) -> (i32, i32) {
    %c0_i32 = arith.constant 0 : i32
    %c0_i32_0 = arith.constant 0 : i32
    return %arg0, %c0_i32 : i32, i32
  }
}

</mosaic_0001>

<bundles_post_ra>
// kernel: tpu_custom_call.1
= control target key start
LH: loop header
LB: loop body
LE: loop exit
PB: predicated region body
PF: predicated region fallthrough
CT: control target
= control target key end

     0   :  { %10 = vsyncpa [#allocation3], 0  ;;  %s636_s0 = inlined_call_operand.hbm [shape: bf16[16,128], index: 0, kind: input, shape index: {}]   ;;  %s637_s1 = inlined_call_operand.hbm [shape: bf16[128,128], index: 1, kind: input, shape index: {}]   ;;  %s638_s2 = inlined_call_operand.vmem [shape: f32[1,128], index: 2, kind: input, shape index: {}]   ;;  %s639_s3 = inlined_call_operand.hbm [shape: bf16[128,128], index: 3, kind: input, shape index: {}]   ;;  %s640_s4 = inlined_call_operand.vmem [shape: f32[1,128], index: 4, kind: input, shape index: {}]   ;;  %s641_s5 = inlined_call_operand.hbm [shape: f32[16,128], index: 5, kind: output, shape index: {}]  }
   0x1   :  { %11 = vsyncpa [#allocation6], 0 }
   0x2   :  { %12 = vsyncpa [#allocation4], 0  ;;  %s526_s18 = smov [#allocation5]   ;;  %s527_s20 = smov [#allocation2]  }
   0x3   :  { %s30_s19 = sshll.u32 %s526_s18, 4  ;;  %s18_s21 = sshll.u32 %s527_s20, 4  ;;  %s31_s19 = int_to_ptr.vmem [resolvable:$true] %s30_s19  ;;  %s566_s21 = int_to_ptr.vmem [resolvable:$true] %s18_s21 }
   0x4   :  { %s432_s24 = scalar_lea.hbm %s637_s1, 1024 }
   0x5   :  { %p433_p0 = scmp.ne.s32.totalorder %s637_s1, %s432_s24  ;;  %p436_p1 = scmp.lt.u32.totalorder %s432_s24, %s637_s1 }
   0x7   :  { %p438_p2 = pnand %p436_p1, %p433_p0 }
   0x9   :  { %441 = shalt.err (!%p438_p2)
}
   0xa   :  { %s442_s29 = scalar_lea.vmem %s31_s19, 1024  ;;  %p447_p4 = scmp.lt.s32.totalorder %s31_s19, %s31_s19 }
   0xb   :  { %p443_p3 = scmp.ne.s32.totalorder %s31_s19, %s442_s29  ;;  %p448_p5 = scmp.lt.s32.totalorder %s442_s29, %s442_s29 }
   0xd   :  { %p449_p6 = por %p448_p5, %p447_p4 }
   0xf   :  { %p450_p7 = pnand %p449_p6, %p443_p3 }
  0x11   :  { %453 = shalt.err (!%p450_p7)
}
  0x12   :  { %s528_s30 = smov 64   ;;  %s529_s6 = smov 4  }
  0x13   :  { %36 = dma.hbm_to_vmem [thread:$0]  %s637_s1, 1024, %s31_s19, [#allocation6], %s528_s30, %s528_s30, %s529_s6  }
  0x14   :  { %s454_s11 = scalar_lea.hbm %s636_s0, 128 }
  0x15   :  { %p455_p8 = scmp.ne.s32.totalorder %s636_s0, %s454_s11  ;;  %p458_p9 = scmp.lt.u32.totalorder %s454_s11, %s636_s0 }
  0x17   :  { %p460_p10 = pnand %p458_p9, %p455_p8 }
  0x19   :  { %463 = shalt.err (!%p460_p10)
}
  0x1a   :  { %s464_s16 = scalar_lea.vmem %s566_s21, 128  ;;  %p469_p12 = scmp.lt.s32.totalorder %s566_s21, %s566_s21 }
  0x1b   :  { %p465_p11 = scmp.ne.s32.totalorder %s566_s21, %s464_s16  ;;  %p470_p13 = scmp.lt.s32.totalorder %s464_s16, %s464_s16 }
  0x1d   :  { %p471_p0 = por %p470_p13, %p469_p12 }
  0x1f   :  { %p472_p1 = pnand %p471_p0, %p465_p11 }
  0x21   :  { %475 = shalt.err (!%p472_p1)
}
  0x22   :  { %24 = dma.hbm_to_vmem [thread:$0]  %s636_s0, 128, %s566_s21, [#allocation3], %s528_s30, %s528_s30, %s529_s6  }
  0x23   :  { %s530_s18 = smov [#allocation7]   ;;  %s476_s23 = scalar_lea.hbm %s639_s3, 1024 }
  0x24   :  { %s44_s19 = sshll.u32 %s530_s18, 4  ;;  %p477_p2 = scmp.ne.s32.totalorder %s639_s3, %s476_s23  ;;  %s45_s19 = int_to_ptr.vmem [resolvable:$true] %s44_s19 }
  0x25   :  { %p480_p3 = scmp.lt.u32.totalorder %s476_s23, %s639_s3 }
  0x27   :  { %p482_p4 = pnand %p480_p3, %p477_p2 }
  0x29   :  { %485 = shalt.err (!%p482_p4)
}
  0x2a   :  { %s486_s28 = scalar_lea.vmem %s45_s19, 1024  ;;  %p491_p6 = scmp.lt.s32.totalorder %s45_s19, %s45_s19 }
  0x2b   :  { %p487_p5 = scmp.ne.s32.totalorder %s45_s19, %s486_s28  ;;  %p492_p7 = scmp.lt.s32.totalorder %s486_s28, %s486_s28 }
  0x2d   :  { %p493_p8 = por %p492_p7, %p491_p6 }
  0x2f   :  { %p494_p9 = pnand %p493_p8, %p487_p5 }
  0x31   :  { %497 = shalt.err (!%p494_p9)
}
  0x32   :  { %50 = dma.hbm_to_vmem [thread:$0]  %s639_s3, 1024, %s45_s19, [#allocation6], %s528_s30, %s528_s30, %s529_s6  }
  0x33   :  { %520 = dma.done.wait [#allocation3], 128  }
  0x34   :  { %521 = vsyncadd [#allocation3], 4294967168 }
  0x35   :  { %522 = dma.done.wait [#allocation6], 2048  }
  0x36   :  { %523 = vsyncadd [#allocation6], 4294965248  ;;  %v531_v0 = vmov 0.0   ;;  %vm532_vm0 = vmmov 0   ;;  %v415_v1 = vld [vmem:[#allocation5] sm:$0xff]   ;;  %v416_v2 = vld [vmem:[#allocation5 + $0x8] sm:$0xff]  }
  0x37   :  { %365 = vmatprep.subr.bf16.mxu0 %v531_v0  ;;  %381 = vmatprep.mubr.msk.bf16.mxu0 %vm532_vm0, %v531_v0  ;;  %v417_v3 = vld [vmem:[#allocation5 + $0x10] sm:$0xff]   ;;  %v424_v4 = vld [vmem:[#allocation7] sm:$0xff]   ;;  %v418_v5 = vld [vmem:[#allocation5 + $0x18] sm:$0xff]   ;;  %s533_s7 = smov [#allocation8]  }
  0x38   :  { %385 = vmatprep.subr.bf16.mxu1 %v531_v0  ;;  %401 = vmatprep.mubr.msk.bf16.mxu1 %vm532_vm0, %v531_v0  ;;  %v425_v6 = vld [vmem:[#allocation7 + $0x8] sm:$0xff]   ;;  %v419_v7 = vld [vmem:[#allocation5 + $0x20] sm:$0xff]   ;;  %v426_v8 = vld [vmem:[#allocation7 + $0x10] sm:$0xff]   ;;  %s315_s8 = sshll.u32 %s533_s7, 4  ;;  %s316_s8 = int_to_ptr.vmem [resolvable:$true] %s315_s8 }
  0x39   :  { %366 = vmatpush3.bf16.msra.mxu0 %v415_v1  ;;  %386 = vmatpush3.bf16.msra.mxu1 %v424_v4  ;;  %v420_v9 = vld [vmem:[#allocation5 + $0x28] sm:$0xff]   ;;  %v427_v10 = vld [vmem:[#allocation7 + $0x18] sm:$0xff]   ;;  %v421_v11 = vld [vmem:[#allocation5 + $0x30] sm:$0xff]   ;;  %p503_p11 = scmp.lt.s32.totalorder %s316_s8, %s316_s8 }
  0x3a   :  { %367 = vmatprep.subr.bf16.mxu0 %v531_v0  ;;  %387 = vmatprep.subr.bf16.mxu1 %v531_v0  ;;  %v428_v12 = vld [vmem:[#allocation7 + $0x20] sm:$0xff]   ;;  %v422_v13 = vld [vmem:[#allocation5 + $0x38] sm:$0xff]   ;;  %v429_v14 = vld [vmem:[#allocation7 + $0x28] sm:$0xff]  }
  0x3b   :  { %v423_v15 = vld [vmem:[#allocation2] sm:$0xff]   ;;  %v430_v16 = vld [vmem:[#allocation7 + $0x30] sm:$0xff]  }
  0x3c   :  { %v431_v17 = vld [vmem:[#allocation7 + $0x38] sm:$0xff]  }
  0x3d   :  { %368 = vmatpush3.bf16.msra.mxu0 %v416_v2  ;;  %388 = vmatpush3.bf16.msra.mxu1 %v425_v6  ;;  %v329_v18 = vld [vmem:[%s638_s2] ss:$0 sm:$0xff]  ;;  %s498_s2 = scalar_lea.vmem %s316_s8, 256 }
  0x3e   :  { %369 = vmatprep.subr.bf16.mxu0 %v531_v0  ;;  %389 = vmatprep.subr.bf16.mxu1 %v531_v0  ;;  %v328_v28 = vld [vmem:[%s640_s4] ss:$0 sm:$0xff]  ;;  %p499_p10 = scmp.ne.s32.totalorder %s316_s8, %s498_s2  ;;  %p504_p12 = scmp.lt.s32.totalorder %s498_s2, %s498_s2 }
  0x40   :  { %p505_p13 = por %p504_p12, %p503_p11 }
  0x41   :  { %370 = vmatpush3.bf16.msra.mxu0 %v417_v3  ;;  %390 = vmatpush3.bf16.msra.mxu1 %v426_v8 }
  0x42   :  { %371 = vmatprep.subr.bf16.mxu0 %v531_v0  ;;  %391 = vmatprep.subr.bf16.mxu1 %v531_v0  ;;  %p506_p0 = pnand %p505_p13, %p499_p10 }
  0x45   :  { %372 = vmatpush3.bf16.msra.mxu0 %v418_v5  ;;  %392 = vmatpush3.bf16.msra.mxu1 %v427_v10 }
  0x46   :  { %373 = vmatprep.subr.bf16.mxu0 %v531_v0  ;;  %393 = vmatprep.subr.bf16.mxu1 %v531_v0 }
  0x49   :  { %374 = vmatpush3.bf16.msra.mxu0 %v419_v7  ;;  %394 = vmatpush3.bf16.msra.mxu1 %v428_v12 }
  0x4a   :  { %375 = vmatprep.subr.bf16.mxu0 %v531_v0  ;;  %395 = vmatprep.subr.bf16.mxu1 %v531_v0 }
  0x4d   :  { %376 = vmatpush3.bf16.msra.mxu0 %v420_v9  ;;  %396 = vmatpush3.bf16.msra.mxu1 %v429_v14 }
  0x4e   :  { %377 = vmatprep.subr.bf16.mxu0 %v531_v0  ;;  %397 = vmatprep.subr.bf16.mxu1 %v531_v0 }
  0x51   :  { %378 = vmatpush3.bf16.msra.mxu0 %v421_v11  ;;  %398 = vmatpush3.bf16.msra.mxu1 %v430_v16 }
  0x52   :  { %379 = vmatprep.subr.bf16.mxu0 %v531_v0  ;;  %399 = vmatprep.subr.bf16.mxu1 %v531_v0 }
  0x55   :  { %380 = vmatpush3.bf16.msra.mxu0 %v422_v13  ;;  %400 = vmatpush3.bf16.msra.mxu1 %v431_v17 }
  0x58   :  { %382 = vmatmul.mubr.bf16.vlgmr.msra.gmra.mrb[0].mxu0 %v423_v15 }
 0x12b   :  { %v189_v19 = vpop.f32.mrb[0].mxu0 }
 0x12c   :  { %v190_v20 = vadd.f32 %v329_v18, %v189_v19  ;;  %v383_v21 = vpop.f32.mrb[1].mxu0 }
 0x12d   :  { %v192_v22 = vpop.f32.mrb[2].mxu0 }
 0x12e   :  { %v193_v23 = vadd.f32 %v329_v18, %v192_v22  ;;  %v384_v24 = vpop.f32.mrb[3].mxu0  ;;  %v196_v25 = vmax.f32 %v190_v20, 0.0 }
 0x130   :  { %v197_v26 = vmax.f32 %v193_v23, 0.0 }
 0x132   :  { %v200_v27 = vpack.c.bf16 %v197_v26, %v196_v25 }
 0x134   :  { %402 = vmatmul.mubr.bf16.vlgmr.msra.gmra.mrb[0].mxu1 %v200_v27 }
 0x207   :  { %v299_v29 = vpop.f32.mrb[0].mxu1 }
 0x208   :  { %v306_v30 = vadd.f32 %v328_v28, %v299_v29  ;;  %v403_v31 = vpop.f32.mrb[1].mxu1 }
 0x209   :  { %v302_v32 = vpop.f32.mrb[2].mxu1 }
 0x20a   :  { %308 = vst [vmem:[#allocation8] sm:$0xff] %v306_v30  ;;  %v307_v33 = vadd.f32 %v328_v28, %v302_v32  ;;  %v404_v34 = vpop.f32.mrb[3].mxu1 }
 0x20c   :  { %309 = vst [vmem:[#allocation8 + $0x8] sm:$0xff] %v307_v33 }
 0x20d   :  { %509 = shalt.err (!%p506_p0)
}
 0x20e   :  { %s510_s10 = scalar_lea.hbm %s641_s5, 256 }
 0x20f   :  { %p511_p1 = scmp.ne.s32.totalorder %s641_s5, %s510_s10  ;;  %p514_p2 = scmp.lt.u32.totalorder %s510_s10, %s641_s5 }
 0x211   :  { %p516_p3 = pnand %p514_p2, %p511_p1 }
 0x213   :  { %519 = shalt.err (!%p516_p3)
}
 0x214   :  { %s534_s15 = smov 128   ;;  %s535_s16 = smov 8  }
 0x215   :  { %321 = dma.vmem_to_hbm [thread:$0]  %s316_s8, 256, %s641_s5, [#allocation4], %s534_s15, %s534_s15, %s535_s16  }
 0x216   :  { %524 = dma.done.wait [#allocation4], 256  }
 0x217   :  { %525 = vsyncadd [#allocation4], 4294967040 }
 0x218   :  { %325 = vsyncpa [#allocation3], 1 }
 0x219   :  { %326 = vsyncpa [#allocation6], 1 }
 0x21a   :  { %327 = vsyncpa [#allocation4], 1 }

</bundles_post_ra>
